<compile_context>
chip_gen: v7x
topology: tpu7x:2x2x1
jax: 0.10.0
libtpu: 0.0.40
codegen_flags: <defaults>
</compile_context>

<pallas_src>
import jax
import jax.numpy as jnp
from jax.experimental import pallas as pl
from jax.experimental.pallas import tpu as pltpu


def se_kernel(x_ref, w1t_ref, w2t_ref, o_ref):
    # x_ref:  (Bt, HW, C)  lane-dense (C on lanes, HW on sublanes)
    # w1t_ref: (C, r)       pre-transposed fc1 weight
    # w2t_ref: (r, C)       pre-transposed fc2 weight
    # o_ref:  (Bt, HW, C)
    x = x_ref[...]                                             # native dtype

    # Squeeze: global average pool over the spatial (sublane) axis,
    # accumulated in f32 regardless of input dtype.
    y = jnp.mean(x, axis=1, dtype=jnp.float32)                 # (Bt, C)

    # Excitation: Linear(C -> r, no bias) + ReLU  (no in-kernel transpose)
    h = jnp.dot(y, w1t_ref[...].astype(jnp.float32),
                preferred_element_type=jnp.float32)            # (Bt, r)
    h = jnp.maximum(h, 0.0)

    # Linear(r -> C, no bias) + Sigmoid
    s = jnp.dot(h, w2t_ref[...].astype(jnp.float32),
                preferred_element_type=jnp.float32)            # (Bt, C)
    s = jax.nn.sigmoid(s)

    # Scale: per-channel gate broadcast over HW (per-lane broadcast), in the
    # input's native dtype -> unmasked lane-dense stores.
    gate = s.astype(o_ref.dtype)                               # (Bt, C)
    o_ref[...] = x * gate[:, None, :]


def _pick_block_b(B, row_bytes, budget_bytes):
    """Largest batch block that fits the per-buffer budget, divides B, and
    keeps >= 2 grid steps when B >= 2 (v7x has 2 TensorCores)."""
    bb = max(1, min(B, budget_bytes // max(1, row_bytes)))
    if B >= 2:
        bb = min(bb, max(1, B // 2))
    while B % bb:
        bb -= 1
    return max(bb, 1)


def se_layer(x, w1, w2, *, block_b=None, vmem_limit_bytes=48 * 1024 * 1024):
    """x: (B, C, H, W) NCHW; w1: (C//r, C); w2: (C, C//r). Returns NCHW."""
    B, C, H, W = x.shape
    r = w1.shape[0]
    assert w1.shape == (r, C) and w2.shape == (C, r)
    HW = H * W

    # Wrapper-side layout work (done once in HBM, not per grid step).
    x2 = jnp.transpose(x.reshape(B, C, HW), (0, 2, 1))          # (B, HW, C)
    w1t = jnp.transpose(w1)                                      # (C, r)
    w2t = jnp.transpose(w2)                                      # (r, C)

    if block_b is None:
        row_bytes = HW * C * x.dtype.itemsize
        # ~1/8 of the VMEM limit per buffer (2x in + 2x out double buffers
        # plus headroom for the tiny weight blocks / scratch).
        block_b = _pick_block_b(B, row_bytes, vmem_limit_bytes // 8)
    assert B % block_b == 0

    grid = (B // block_b,)

    out2 = pl.pallas_call(
        se_kernel,
        out_shape=jax.ShapeDtypeStruct((B, HW, C), x.dtype),
        grid_spec=pltpu.PrefetchScalarGridSpec(
            num_scalar_prefetch=0,
            grid=grid,
            in_specs=[
                pl.BlockSpec((block_b, HW, C), lambda b: (b, 0, 0)),
                pl.BlockSpec((C, r), lambda b: (0, 0)),
                pl.BlockSpec((r, C), lambda b: (0, 0)),
            ],
            out_specs=pl.BlockSpec((block_b, HW, C), lambda b: (b, 0, 0)),
        ),
        compiler_params=pltpu.CompilerParams(
            dimension_semantics=("parallel",),
            vmem_limit_bytes=vmem_limit_bytes,
        ),
    )(x2, w1t, w2t)

    # Back to NCHW for the caller.
    return jnp.transpose(out2, (0, 2, 1)).reshape(B, C, H, W)


def se_layer_ref(x, w1, w2):
    # Pure-JAX reference for verification (matches the PyTorch module).
    y = jnp.mean(x, axis=(2, 3))                      # (B, C)
    h = jnp.maximum(y @ w1.T, 0.0)                    # (B, r)
    s = jax.nn.sigmoid(h @ w2.T)                      # (B, C)
    return x * s[:, :, None, None]


if __name__ == "__main__":
    key = jax.random.PRNGKey(0)
    k_x, k_w1, k_w2 = jax.random.split(key, 3)

    # channel must be divisible by reduction (default 64): use C=128, r=2
    B, C, H, W = 2, 128, 8, 8
    reduction = 64
    r = C // reduction

    x = jax.random.normal(k_x, (B, C, H, W), dtype=jnp.float32)
    # torch Linear weight layout: [out_features, in_features]
    w1 = jax.random.normal(k_w1, (r, C), dtype=jnp.float32) * 0.1   # (r, C)
    w2 = jax.random.normal(k_w2, (C, r), dtype=jnp.float32) * 0.1   # (C, r)

    out = se_layer(x, w1, w2)
    jax.block_until_ready(out)

    ref = se_layer_ref(x, w1, w2)
    assert out.shape == (B, C, H, W)
    assert jnp.allclose(out, ref, atol=1e-5, rtol=1e-5), "mismatch vs reference"

    print("KERNEL_OK")
</pallas_src>

<mosaic_0001>
module attributes {stable_mosaic.version = 11 : i64} {
  func.func @se_kernel(%arg0: i32, %arg1: memref<1x64x128xf32, #tpu.memory_space<vmem>>, %arg2: memref<128x2xf32, #tpu.memory_space<vmem>>, %arg3: memref<2x128xf32, #tpu.memory_space<vmem>>, %arg4: memref<1x64x128xf32, #tpu.memory_space<vmem>>) attributes {dimension_semantics = [#tpu.dimension_semantics<parallel>], iteration_bounds = array<i64: 2>, scalar_prefetch = 0 : i64, scratch_operands = 0 : i64, tpu.core_type = #tpu.core_type<tc>, window_params = [{transform_indices = @transform_0, window_bounds = array<i64: 1, 64, 128>}, {pipeline_mode = #tpu.pipeline_mode<synchronous>, transform_indices = @transform_1, window_bounds = array<i64: 128, 2>}, {pipeline_mode = #tpu.pipeline_mode<synchronous>, transform_indices = @transform_2, window_bounds = array<i64: 2, 128>}, {transform_indices = @transform_3, window_bounds = array<i64: 1, 64, 128>}]} {
    %c0 = arith.constant 0 : index
    %c0_0 = arith.constant 0 : index
    %c0_1 = arith.constant 0 : index
    %0 = vector.load %arg1[%c0, %c0_0, %c0_1] : memref<1x64x128xf32, #tpu.memory_space<vmem>>, vector<1x64x128xf32>
    %cst = arith.constant dense<0.000000e+00> : vector<1x128xf32>
    %1 = vector.multi_reduction <add>, %0, %cst [1] : vector<1x64x128xf32> to vector<1x128xf32>
    %cst_2 = arith.constant 6.400000e+01 : f32
    %2 = vector.broadcast %cst_2 : f32 to vector<1x128xf32>
    %3 = arith.divf %1, %2 : vector<1x128xf32>
    %c0_3 = arith.constant 0 : index
    %c0_4 = arith.constant 0 : index
    %4 = vector.load %arg2[%c0_3, %c0_4] : memref<128x2xf32, #tpu.memory_space<vmem>>, vector<128x2xf32>
    %cst_5 = arith.constant dense<0.000000e+00> : vector<1x2xf32>
    %5 = tpu.matmul %3, %4, %cst_5 {dimension_numbers = #tpu.dot_dimension_numbers<[1], [0], [0], [1], [0, 0, 1, 1], [], []>} : vector<1x128xf32>, vector<128x2xf32>, vector<1x2xf32> -> vector<1x2xf32>
    %cst_6 = arith.constant 0.000000e+00 : f32
    %6 = vector.broadcast %cst_6 : f32 to vector<1x2xf32>
    %7 = arith.maximumf %5, %6 : vector<1x2xf32>
    %c0_7 = arith.constant 0 : index
    %c0_8 = arith.constant 0 : index
    %8 = vector.load %arg3[%c0_7, %c0_8] : memref<2x128xf32, #tpu.memory_space<vmem>>, vector<2x128xf32>
    %cst_9 = arith.constant dense<0.000000e+00> : vector<1x128xf32>
    %9 = tpu.matmul %7, %8, %cst_9 {dimension_numbers = #tpu.dot_dimension_numbers<[1], [0], [0], [1], [0, 0, 1, 1], [], []>} : vector<1x2xf32>, vector<2x128xf32>, vector<1x128xf32> -> vector<1x128xf32>
    %10 = arith.negf %9 : vector<1x128xf32>
    %11 = math.exp %10 : vector<1x128xf32>
    %cst_10 = arith.constant 1.000000e+00 : f32
    %12 = vector.broadcast %cst_10 : f32 to vector<1x128xf32>
    %13 = arith.addf %12, %11 : vector<1x128xf32>
    %14 = arith.divf %12, %13 : vector<1x128xf32>
    %15 = vector.shape_cast %14 : vector<1x128xf32> to vector<1x1x128xf32>
    %16 = vector.broadcast %15 : vector<1x1x128xf32> to vector<1x64x128xf32>
    %17 = arith.mulf %0, %16 : vector<1x64x128xf32>
    %c0_11 = arith.constant 0 : index
    %c0_12 = arith.constant 0 : index
    %c0_13 = arith.constant 0 : index
    %18 = vector.load %arg4[%c0_11, %c0_12, %c0_13] : memref<1x64x128xf32, #tpu.memory_space<vmem>>, vector<1x64x128xf32>
    tpu.vector_store %arg4[%c0_11, %c0_12, %c0_13], %17 {strides = array<i32>} : memref<1x64x128xf32, #tpu.memory_space<vmem>>, vector<1x64x128xf32>,
    return
  }
  func.func @transform_0(%arg0: i32) -> (i32, i32, i32) {
    %c0_i32 = arith.constant 0 : i32
    %c0_i32_0 = arith.constant 0 : i32
    %c0_i32_1 = arith.constant 0 : i32
    return %arg0, %c0_i32, %c0_i32_0 : i32, i32, i32
  }
  func.func @transform_1(%arg0: i32) -> (i32, i32) {
    %c0_i32 = arith.constant 0 : i32
    %c0_i32_0 = arith.constant 0 : i32
    %c0_i32_1 = arith.constant 0 : i32
    return %c0_i32, %c0_i32_0 : i32, i32
  }
  func.func @transform_2(%arg0: i32) -> (i32, i32) {
    %c0_i32 = arith.constant 0 : i32
    %c0_i32_0 = arith.constant 0 : i32
    %c0_i32_1 = arith.constant 0 : i32
    return %c0_i32, %c0_i32_0 : i32, i32
  }
  func.func @transform_3(%arg0: i32) -> (i32, i32, i32) {
    %c0_i32 = arith.constant 0 : i32
    %c0_i32_0 = arith.constant 0 : i32
    %c0_i32_1 = arith.constant 0 : i32
    return %arg0, %c0_i32, %c0_i32_0 : i32, i32, i32
  }
}

</mosaic_0001>

<bundles_post_ra>
// kernel: tpu_custom_call.1
= control target key start
LH: loop header
LB: loop body
LE: loop exit
PB: predicated region body
PF: predicated region fallthrough
CT: control target
= control target key end

     0   :  { %8 = vsyncpa [#allocation3], 0  ;;  %s888_s0 = inlined_call_operand.vmem [shape: f32[2,64,128], index: 0, kind: input, shape index: {}]   ;;  %s889_s1 = inlined_call_operand.vmem [shape: f32[128,2], index: 1, kind: input, shape index: {}]   ;;  %s890_s2 = inlined_call_operand.vmem [shape: f32[2,128], index: 2, kind: input, shape index: {}]   ;;  %s891_s3 = inlined_call_operand.hbm [shape: f32[2,64,128], index: 3, kind: output, shape index: {}]  }
   0x1   :  { %10 = vsyncpa [#allocation3 + $0x1], 0  ;;  %s698_s12 = smov 0   ;;  %s700_s13 = smov 0  }
   0x2   :  { %s702_s14 = smov 0   ;;  %s704_s15 = smov 0  }
   0x3 LB: > { %s719_s16 = sadd.s32 4294967295, %s670_s15   ;;  %s460_s17 = sadd.s32 4294967294, %s670_s15   ;;  %s670_s15 = sphi %s704_s15, %s897_s15   ;;  %s666_s14 = sphi %s702_s14, %s896_s14   ;;  %s662_s13 = sphi %s700_s13, %s895_s13   ;;  %s658_s12 = sphi %s698_s12, %s894_s12  }
   0x4   : > { %s723_s18 = sadd.s32 1, %s670_s15   ;;  %s91_s19 = sadd.s32 1, %s666_s14 }
   0x5   : > { %s88_s20 = ssub.s32 %s670_s15, %s723_s18  ;;  %p101_p0 = scmp.ne.s32.totalorder %s666_s14, %s662_s13 }
   0x6   : > { %p89_p1 = scmp.eq.s32.totalorder %s88_s20, 0  ;;  %p102_p2 = scmp.eq.s32.totalorder %s719_s16, 1 }
   0x7   : > { %p107_p3 = scmp.ne.s32.totalorder %s662_s13, %s658_s12  ;;  %p108_p4 = scmp.eq.s32.totalorder %s460_s17, 1 }
   0x8   : > { %s734_s21 = scalar_select %p89_p1, %s666_s14, %s91_s19  }
   0x9   : > { %p736_p5 = por %p102_p2, %p101_p0  ;;  %p740_p6 = por %p108_p4, %p107_p3 }
   0xa   : > { %p463_p7 = scmp.ge.s32.totalorder %s670_s15, 1  ;;  %p140_p8 = scmp.lt.s32.totalorder %s670_s15, 3 }
   0xc   : > { %p141_p9 = pnand %p463_p7, %p140_p8 }
   0xd   : > { %v192_v0 = vld [vmem:[%s889_s1] sm:$0xff] (!%p141_p9)  ;;  %v193_v1 = vld [vmem:[%s889_s1 + $0x8] sm:$0xff] (!%p141_p9)  ;;  %v194_v2 = vld [vmem:[%s889_s1 + $0x10] sm:$0xff] (!%p141_p9)  ;;  %v672_v3 = vmov (!%p141_p9), 0.0|0.0   ;;  %vm673_vm0 = vmmov (!%p141_p9), 0   ;;  %v674_v6 = vmov (!%p141_p9), 0.0   ;;  %v364_v57 = vlaneseq (!%p141_p9) }
   0xe   : > { %144 = sbr.rel (%p141_p9) target bundleno = 528 (0x210), region = 32  ;;  %536 = vmatprep.subr.bf16.mxu0 (!%p141_p9), %v672_v3  ;;  %v537_v4 = vpack.c.bf16 (!%p141_p9), %v193_v1, %v192_v0  ;;  %v195_v5 = vld [vmem:[%s889_s1 + $0x18] sm:$0xff] (!%p141_p9)  ;;  %528 = vmatprep.mubr.msk.f32.mxu0 (!%p141_p9), %vm673_vm0, %v674_v6  ;;  %p164_p10 = scmp.lt.s32.totalorder (!%p141_p9), %s719_s16, 1  ;;  %v196_v8 = vld [vmem:[%s889_s1 + $0x20] sm:$0xff] (!%p141_p9)  ;;  %v197_v9 = vld [vmem:[%s889_s1 + $0x28] sm:$0xff] (!%p141_p9)  ;;  %vm284_vm1 = vcmask (!%p141_p9), 1041408  }
   0xf   : > { %531 = vmatprep.subr.mxu1 (!%p141_p9), %v674_v6  ;;  %533 = vmatprep.mubr.msk.f32.mxu1 (!%p141_p9), %vm673_vm0, %v674_v6  ;;  %v540_v7 = vpack.c.bf16 (!%p141_p9), %v195_v5, %v194_v2  ;;  %v543_v10 = vpack.c.bf16 (!%p141_p9), %v197_v9, %v196_v8  ;;  %v198_v14 = vld [vmem:[%s889_s1 + $0x30] sm:$0xff] (!%p141_p9)  ;;  %v199_v15 = vld [vmem:[%s889_s1 + $0x38] sm:$0xff] (!%p141_p9)  ;;  %v200_v21 = vld [vmem:[%s889_s1 + $0x40] sm:$0xff] (!%p141_p9)  ;;  %vm280_vm2 = vcmask (!%p141_p9), 15360   ;;  %s161_s27 = sand.u32 (!%p141_p9), 1, %s662_s13   ;;  %v365_v58 = vshrl.u32 (!%p141_p9), %v364_v57, 7 }
  0x10   : > { %538 = vmatpush3.bf16.msra.mxu0 (!%p141_p9), %v537_v4  ;;  %v546_v19 = vpack.c.bf16 (!%p141_p9), %v199_v15, %v198_v14  ;;  %v201_v22 = vld [vmem:[%s889_s1 + $0x48] sm:$0xff] (!%p141_p9)  ;;  %v202_v28 = vld [vmem:[%s889_s1 + $0x50] sm:$0xff] (!%p141_p9)  ;;  %v203_v29 = vld [vmem:[%s889_s1 + $0x58] sm:$0xff] (!%p141_p9)  ;;  %s464_s28 = sshll.u32 (!%p141_p9), %s161_s27, 6  ;;  %s476_s29 = sshll.u32 (!%p141_p9), %s719_s16, 10 }
  0x11   : > { %539 = vmatprep.subr.bf16.mxu0 (!%p141_p9), %v672_v3  ;;  %v549_v26 = vpack.c.bf16 (!%p141_p9), %v201_v22, %v200_v21  ;;  %v552_v33 = vpack.c.bf16 (!%p141_p9), %v203_v29, %v202_v28  ;;  %v204_v34 = vld [vmem:[%s889_s1 + $0x60] sm:$0xff] (!%p141_p9)  ;;  %v205_v35 = vld [vmem:[%s889_s1 + $0x68] sm:$0xff] (!%p141_p9)  ;;  %v206_v39 = vld [vmem:[%s889_s1 + $0x70] sm:$0xff] (!%p141_p9)  ;;  %v366_v59 = vsub.s32 (!%p141_p9), 0, %v365_v58  ;;  %s163_s30 = scalar_lea.vmem (!%p141_p9), [#allocation2], %s464_s28  ;;  %s840_s7 = scalar_lea.hbm (!%p141_p9), %s891_s3, %s476_s29 }
  0x12   : > { %v555_v38 = vpack.c.bf16 (!%p141_p9), %v205_v35, %v204_v34  ;;  %v207_v40 = vld [vmem:[%s889_s1 + $0x78] sm:$0xff] (!%p141_p9)  ;;  %v279_v48 = vld [vmem:[%s890_s2] sm:$0x3] (!%p141_p9)  ;;  %s398_s4 = sshll.u32 (!%p141_p9), %s163_s30, 4  ;;  %s675_s9 = smov (!%p141_p9), [#allocation2]   ;;  %s842_s4 = int_to_ptr.vmem [resolvable:$true] %s398_s4 }
  0x13   : > { %v558_v43 = vpack.c.bf16 (!%p141_p9), %v207_v40, %v206_v39  ;;  %532 = vmatpush3.msk.msra.mxu1 (!%p141_p9), %vm284_vm1, %v279_v48  ;;  %s608_s8 = scalar_lea.vmem (!%p141_p9), %s842_s4, 1024 }
  0x14   : > { %541 = vmatpush3.bf16.msra.mxu0 (!%p141_p9), %v540_v7  ;;  %p609_p11 = scmp.ne.s32.totalorder (!%p141_p9), %s842_s4, %s608_s8 }
  0x15   : > { %s165_s5 = scalar_select %p164_p10, %s719_s16, 1  ;;  %542 = vmatprep.subr.bf16.mxu0 %v672_v3 }
  0x16   : > { %s847_s16 = scalar_lea.sflag [#allocation3], %s161_s27  ;;  %p610_p12 = pnand %p609_p11, %p736_p5 }
  0x17   : > { %s475_s10 = sshll.u32 %s165_s5, 6 }
  0x18   : > { %s168_s19 = scalar_lea.vmem %s888_s0, %s475_s10  ;;  %544 = vmatpush3.bf16.msra.mxu0 %v543_v10  ;;  %p611_p13 = pneg %p610_p12 }
  0x19   : > { %v771_v11 = vld [vmem:[%s168_s19] sm:$0xff]  ;;  %v773_v12 = vld [vmem:[%s168_s19 + $0x8] sm:$0xff]  ;;  %v775_v13 = vld [vmem:[%s168_s19 + $0x10] sm:$0xff]  ;;  %545 = vmatprep.subr.bf16.mxu0 %v672_v3  ;;  %s612_s10 = sshll.u32 %s675_s9, 4  ;;  %s613_s10 = int_to_ptr.vmem [resolvable:$false] %s612_s10 }
  0x1a   : > { %v177_v16 = vadd.f32 %v773_v12, %v771_v11  ;;  %v786_v17 = vld [vmem:[%s168_s19 + $0x18] sm:$0xff]  ;;  %v789_v20 = vld [vmem:[%s168_s19 + $0x20] sm:$0xff]  ;;  %v799_v24 = vld [vmem:[%s168_s19 + $0x28] sm:$0xff]  ;;  %s614_s11 = scalar_lea.vmem %s613_s10, 2048  ;;  %p615_p0 = scmp.lt.s32.totalorder %s842_s4, %s613_s10 }
  0x1b   : > { %v802_v27 = vld [vmem:[%s168_s19 + $0x30] sm:$0xff]  ;;  %v176_v31 = vld [vmem:[%s168_s19 + $0x38] sm:$0xff]  ;;  %p616_p1 = scmp.lt.s32.totalorder %s614_s11, %s608_s8 }
  0x1c   : > { %v178_v18 = vadd.f32 %v177_v16, %v775_v13  ;;  %547 = vmatpush3.bf16.msra.mxu0 %v546_v19 }
  0x1d   : > { %548 = vmatprep.subr.bf16.mxu0 %v672_v3  ;;  %p617_p2 = por %p616_p1, %p615_p0 }
  0x1e   : > { %v179_v23 = vadd.f32 %v178_v18, %v786_v17 }
  0x1f   : > { %p618_p3 = pnand %p617_p2, %p611_p13 }
  0x20   : > { %v180_v25 = vadd.f32 %v179_v23, %v789_v20  ;;  %550 = vmatpush3.bf16.msra.mxu0 %v549_v26 }
  0x21   : > { %551 = vmatprep.subr.bf16.mxu0 %v672_v3 }
  0x22   : > { %v181_v30 = vadd.f32 %v180_v25, %v799_v24 }
  0x24   : > { %v182_v32 = vadd.f32 %v181_v30, %v802_v27  ;;  %553 = vmatpush3.bf16.msra.mxu0 %v552_v33 }
  0x25   : > { %554 = vmatprep.subr.bf16.mxu0 %v672_v3 }
  0x26   : > { %v183_v36 = vadd.f32 %v182_v32, %v176_v31 }
  0x28   : > { %v184_v37 = vrot.slane %v183_v36, 4  ;;  %556 = vmatpush3.bf16.msra.mxu0 %v555_v38 }
  0x29   : > { %557 = vmatprep.subr.bf16.mxu0 %v672_v3 }
  0x2a   : > { %v185_v41 = vadd.f32 %v184_v37, %v183_v36 }
  0x2c   : > { %v186_v42 = vrot.slane %v185_v41, 2  ;;  %559 = vmatpush3.bf16.msra.mxu0 %v558_v43 }
  0x2e   : > { %v187_v44 = vadd.f32 %v186_v42, %v185_v41 }
  0x30   : > { %v188_v45 = vrot.slane %v187_v44, 1 }
  0x32   : > { %v189_v46 = vadd.f32 %v188_v45, %v187_v44 }
  0x34   : > { %v191_v47 = vmul.f32 0.015625, %v189_v46 }
  0x36   : > { %529 = vmatmul.mubr.f32.vlgmr.msra.gmra.mrb[0].mxu0 %v191_v47 }
 0x109   : > { %v274_v49 = vpop.f32.mrb[0].mxu0 }
 0x10a   : > { %v278_v50 = vmax.f32 %v274_v49, 0.0  ;;  %v530_v51 = vpop.f32.mrb[1].mxu0 }
 0x10c   : > { %534 = vmatmul.mubr.msk.f32.vlgmr.msra.gmra.mrb[0].mxu1 %vm280_vm2, %v278_v50 }
 0x1df   : > { %v354_v52 = vpop.f32.mrb[0].mxu1 }
 0x1e0   : > { %v469_v53 = vmul.f32 -1.442695, %v354_v52  ;;  %v535_v54 = vpop.f32.mrb[1].mxu1 }
 0x1e2   : > { %604 = vpow2.f32 %v469_v53 }
 0x1ec   : > { %v605_v55 = vpop.eup %604 }
 0x1ed   : > { %v361_v56 = vadd.f32 1.0, %v605_v55 }
 0x1ef   : > { %606 = vrcp.f32 %v361_v56 }
 0x1f9   : > { %v607_v60 = vpop.eup %606 }
 0x1fa   : > { %v367_v61 = vrot.slane %v607_v60, %v366_v59 }
 0x1fc   : > { %v368_v62 = vmul.f32 %v367_v61, %v771_v11  ;;  %v369_v63 = vmul.f32 %v367_v61, %v773_v12  ;;  %v370_v0 = vmul.f32 %v367_v61, %v775_v13  ;;  %v371_v1 = vmul.f32 %v367_v61, %v786_v17 }
 0x1fd   : > { %v372_v2 = vmul.f32 %v367_v61, %v789_v20  ;;  %v373_v3 = vmul.f32 %v367_v61, %v799_v24  ;;  %v374_v4 = vmul.f32 %v367_v61, %v802_v27  ;;  %v375_v5 = vmul.f32 %v367_v61, %v176_v31 }
 0x1fe   : > { %376 = vst [vmem:[%s163_s30] sm:$0xff] %v368_v62  ;;  %377 = vst [vmem:[%s163_s30 + $0x8] sm:$0xff] %v369_v63 }
 0x1ff   : > { %378 = vst [vmem:[%s163_s30 + $0x10] sm:$0xff] %v370_v0  ;;  %379 = vst [vmem:[%s163_s30 + $0x18] sm:$0xff] %v371_v1 }
 0x200   : > { %380 = vst [vmem:[%s163_s30 + $0x20] sm:$0xff] %v372_v2  ;;  %381 = vst [vmem:[%s163_s30 + $0x28] sm:$0xff] %v373_v3 }
 0x201   : > { %382 = vst [vmem:[%s163_s30 + $0x30] sm:$0xff] %v374_v4  ;;  %383 = vst [vmem:[%s163_s30 + $0x38] sm:$0xff] %v375_v5 }
 0x202   : > { %621 = shalt.err (!%p618_p3)
}
 0x203   : > { %s622_s17 = scalar_lea.hbm %s840_s7, 1024  ;;  %s626_s24 = scalar_lea.hbm %s891_s3, 2048 }
 0x204   : > { %p623_p4 = scmp.ne.s32.totalorder %s840_s7, %s622_s17  ;;  %p627_p9 = scmp.lt.u32.totalorder %s840_s7, %s891_s3 }
 0x205   : > { %p628_p10 = scmp.lt.u32.totalorder %s626_s24, %s622_s17  ;;  %p630_p12 = scmp.lt.u32.totalorder %s622_s17, %s840_s7 }
 0x206   : > { %p624_p7 = pnand %p623_p4, %p736_p5 }
 0x207   : > { %p629_p11 = por %p628_p10, %p627_p9 }
 0x208   : > { %p625_p8 = pneg %p624_p7 }
 0x209   : > { %p631_p13 = por %p630_p12, %p629_p11 }
 0x20b   : > { %p632_p0 = pnand %p631_p13, %p625_p8 }
 0x20d   : > { %635 = shalt.err (!%p632_p0)
}
 0x20e   : > { %s676_s27 = smov 128   ;;  %s677_s28 = smov 8  }
 0x20f   : > { %560 = dma.vmem_to_hbm [thread:$0]  (%p736_p5), %s842_s4, 1024, %s840_s7, %s847_s16, %s676_s27, %s676_s27, %s677_s28  }
 0x210 PF: > { %p566_p1 = scmp.ge.s32.totalorder %s670_s15, 2  ;;  %s413_s29 = sand.u32 1, %s658_s12  }
 0x211   : > { %s414_s30 = scalar_lea.sflag [#allocation3], %s413_s29 }
 0x212   : > { %p563_p2 = pnand %p566_p1, %p740_p6 }
 0x214   : > { %653 = dma.done.wait (!%p563_p2), %s414_s30, 1024  }
 0x215   : > { %655 = vsyncadd (!%p563_p2), %s414_s30, 4294966272  ;;  %p13_p3 = scmp.ge.s32.totalorder %s723_s18, 4   ;;  %s894_s12 = smov %s662_s13 }
 0x216   : > { %s895_s13 = smov %s666_s14  ;;  %s896_s14 = smov %s734_s21 }
 0x217   : > { %s897_s15 = smov %s723_s18  ;;  %15 = sbr.rel (!%p13_p3) target bundleno = 3 (0x3), region = 67 }
 0x21e   :  { %419 = vsyncpa [#allocation3], 1 }
 0x21f   :  { %421 = vsyncpa [#allocation3 + $0x1], 1 }

</bundles_post_ra>
